<compile_context>
chip_gen: v5e
topology: v5e:2x2
jax: 0.10.0
libtpu: 0.0.40
codegen_flags: <defaults>
</compile_context>

<pallas_src>
import functools

import jax
import jax.numpy as jnp
from jax.experimental import pallas as pl
from jax.experimental.pallas import tpu as pltpu


def _round_up(x, m):
    return ((x + m - 1) // m) * m


def _elu(x):
    # ELU(alpha=1): x if x > 0 else exp(x) - 1.
    return jnp.where(x > 0, x, jnp.exp(jnp.minimum(x, 0.0)) - 1.0)


def actor_mlp_kernel(x_ref, w_ref, b_ref, logits_ref, *, in_dim, n_pad):
    """4-layer MLP with ELU after every layer (matches the reference MLP).

    x_ref: [tm, in_dim] activations (matmul dtype), in_dim = hidden + z_dim.
    w_ref: row-stacked [in_dim + 3*n_pad, n_pad] weight slab
             rows [0 : in_dim)                 -> W1
             next n_pad rows                   -> W2 (zero-padded)
             next n_pad rows                   -> W3 (zero-padded)
             next n_pad rows                   -> W4 (zero-padded)
    b_ref: [4, n_pad] biases (zero-padded), f32.
    logits_ref: [tm, n_pad] f32; padded lanes are exactly 0 (zero weights /
                zero bias and ELU(0) == 0), wrapper slices them away.
    """
    mm_dt = w_ref.dtype  # bf16 by default; f32 accumulation below.
    x = x_ref[...]

    o1 = in_dim
    o2 = o1 + n_pad
    o3 = o2 + n_pad
    o4 = o3 + n_pad

    a = _elu(jnp.dot(x, w_ref[0:o1, :],
                     preferred_element_type=jnp.float32) + b_ref[0:1, :])
    a = _elu(jnp.dot(a.astype(mm_dt), w_ref[o1:o2, :],
                     preferred_element_type=jnp.float32) + b_ref[1:2, :])
    a = _elu(jnp.dot(a.astype(mm_dt), w_ref[o2:o3, :],
                     preferred_element_type=jnp.float32) + b_ref[2:3, :])
    logits = _elu(jnp.dot(a.astype(mm_dt), w_ref[o3:o4, :],
                          preferred_element_type=jnp.float32) + b_ref[3:4, :])

    # Single lane-dense 128-wide store per grid step.
    logits_ref[...] = logits


def init_actor_params(key, in_dim, action_dim, mlp_size=32, mlp_depth=4):
    """nn.Linear default init: U(-1/sqrt(fan_in), +1/sqrt(fan_in))."""
    dims = [in_dim] + [mlp_size] * (mlp_depth - 1) + [action_dim]
    params = []
    for i in range(len(dims) - 1):
        key, kw, kb = jax.random.split(key, 3)
        fan_in, fan_out = dims[i], dims[i + 1]
        bound = 1.0 / jnp.sqrt(jnp.float32(fan_in))
        w = jax.random.uniform(kw, (fan_in, fan_out), jnp.float32, -bound, bound)
        b = jax.random.uniform(kb, (1, fan_out), jnp.float32, -bound, bound)
        params.append((w, b))
    return params


def pack_actor_params(params, *, hidden_size, z_dim, action_dim,
                      matmul_dtype=jnp.bfloat16):
    """One-time packing: 8 tensors -> 1 weight slab + 1 bias slab.

    All fan_out dims are zero-padded to n_pad = round_up(max(mlp, action), 128)
    so every in-kernel activation / output store is lane-dense.  Since the
    padding is zeros and ELU(0) == 0, padded lanes stay exactly 0 through
    every layer, so the math in the real lanes is unchanged.
    """
    assert len(params) == 4, "kernel is specialized to mlp_depth=4"
    (w1, b1), (w2, b2), (w3, b3), (w4, b4) = params
    in_dim = hidden_size + z_dim
    assert w1.shape[0] == in_dim
    mlp = w2.shape[0]
    n_pad = _round_up(max(mlp, action_dim), 128)

    def pad_cols(w):
        return jnp.pad(w, ((0, 0), (0, n_pad - w.shape[1])))

    def pad_full(w):
        return jnp.pad(w, ((0, n_pad - w.shape[0]), (0, n_pad - w.shape[1])))

    w_pack = jnp.concatenate(
        [pad_cols(w1), pad_full(w2), pad_full(w3), pad_full(w4)], axis=0
    ).astype(matmul_dtype)

    def pad_b(b):
        b = b.reshape(1, -1)
        return jnp.pad(b, ((0, 0), (0, n_pad - b.shape[1])))

    b_pack = jnp.concatenate([pad_b(b1), pad_b(b2), pad_b(b3), pad_b(b4)],
                             axis=0).astype(jnp.float32)

    meta = dict(in_dim=in_dim, n_pad=n_pad, action_dim=action_dim)
    return w_pack, b_pack, meta


def actor_forward(state, w_pack, b_pack, meta):
    # Wrapper-side concat + cast: one lane-dense [B, 64] input in the matmul
    # dtype (halves input HBM bytes vs two f32 inputs, one DMA per step).
    x = jnp.concatenate(
        [state["h"], state["z"]], axis=-1).astype(w_pack.dtype)
    B, in_dim = x.shape
    n_pad, action_dim = meta["n_pad"], meta["action_dim"]
    assert in_dim == meta["in_dim"]

    # Batch tiling:
    #   B <= 8  -> single full-array block (launch-overhead bound anyway).
    #   B >  8  -> at least 2 grid steps so "parallel" shards across both v7x
    #              TensorCores; tile capped at 4096 rows (~0.75 KiB/row incl.
    #              double buffers -> ~3 MiB, well under the 32 MiB scoped
    #              VMEM default on v6e/v7x).
    if B <= 8:
        tm = B
    else:
        tm = min(4096, _round_up(pl.cdiv(B, 2), 8))
    grid = (pl.cdiv(B, tm),)

    kernel = functools.partial(actor_mlp_kernel, in_dim=in_dim, n_pad=n_pad)

    # NOTE: if B is not a multiple of tm, the tail block processes padded
    # rows past B; they are sliced away below and never reduced over.
    logits_p = pl.pallas_call(
        kernel,
        grid=grid,
        in_specs=[
            pl.BlockSpec((tm, in_dim), lambda i: (i, 0)),
            # Weights/biases: constant index_map + single-buffered -> stay
            # VMEM-resident with no redundant second buffer.
            pl.BlockSpec(w_pack.shape, lambda i: (0, 0),
                         pipeline_mode=pl.Buffered(1)),
            pl.BlockSpec(b_pack.shape, lambda i: (0, 0),
                         pipeline_mode=pl.Buffered(1)),
        ],
        out_specs=pl.BlockSpec((tm, n_pad), lambda i: (i, 0)),
        out_shape=jax.ShapeDtypeStruct((B, n_pad), jnp.float32),
        compiler_params=pltpu.CompilerParams(
            dimension_semantics=("parallel",),
            vmem_limit_bytes=32 * 1024 * 1024,
        ),
    )(x, w_pack, b_pack)

    # Drop lane padding; compute the OneHotCategorical probs on the real
    # action lanes in the wrapper (exact softmax, trivial XLA op on 3 lanes,
    # and it halves the kernel's HBM writeback).
    logits = logits_p[:, :action_dim]
    probs = jax.nn.softmax(logits, axis=-1)
    return logits, probs


if __name__ == "__main__":
    # Small shapes consistent with the module:
    #   stoch_vars=4, stoch_classes=8 -> z dim = 32; hidden_size=32
    #   in_dim = 64, mlp_size=32, mlp_depth=4, action_dim=3
    B = 2
    stoch_vars, stoch_classes = 4, 8
    hidden_size = 32
    action_dim = 3
    mlp_size = 32
    mlp_depth = 4
    in_dim = stoch_vars * stoch_classes + hidden_size

    key = jax.random.PRNGKey(0)
    k_h, k_z, k_p = jax.random.split(key, 3)
    state = {
        "h": jax.random.normal(k_h, (B, hidden_size), jnp.float32),
        "z": jax.random.normal(k_z, (B, stoch_vars * stoch_classes), jnp.float32),
    }
    params = init_actor_params(k_p, in_dim, action_dim, mlp_size, mlp_depth)
    w_pack, b_pack, meta = pack_actor_params(
        params, hidden_size=hidden_size, z_dim=stoch_vars * stoch_classes,
        action_dim=action_dim, matmul_dtype=jnp.bfloat16)

    logits, probs = actor_forward(state, w_pack, b_pack, meta)
    jax.block_until_ready((logits, probs))

    # TODO(synk): OneHotCategorical sampling is not reproduced here; the kernel
    # returns the distribution parameters (logits) and exact softmax probs.
    print("KERNEL_OK")
</pallas_src>

<mosaic_0001>
module attributes {stable_mosaic.version = 11 : i64} {
  func.func @actor_mlp_kernel(%arg0: i32, %arg1: memref<2x64xbf16, #tpu.memory_space<vmem>>, %arg2: memref<448x128xbf16, #tpu.memory_space<vmem>>, %arg3: memref<4x128xf32, #tpu.memory_space<vmem>>, %arg4: memref<2x128xf32, #tpu.memory_space<vmem>>) attributes {dimension_semantics = [#tpu.dimension_semantics<parallel>], iteration_bounds = array<i64: 1>, scalar_prefetch = 0 : i64, scratch_operands = 0 : i64, tpu.core_type = #tpu.core_type<tc>, window_params = [{transform_indices = @transform_0, window_bounds = array<i64: 2, 64>}, {pipeline_mode = #tpu.pipeline_mode<synchronous>, transform_indices = @transform_1, window_bounds = array<i64: 448, 128>}, {pipeline_mode = #tpu.pipeline_mode<synchronous>, transform_indices = @transform_2, window_bounds = array<i64: 4, 128>}, {transform_indices = @transform_3, window_bounds = array<i64: 2, 128>}]} {
    %c0 = arith.constant 0 : index
    %c0_0 = arith.constant 0 : index
    %0 = vector.load %arg1[%c0, %c0_0] : memref<2x64xbf16, #tpu.memory_space<vmem>>, vector<2x64xbf16>
    %c0_1 = arith.constant 0 : index
    %c0_2 = arith.constant 0 : index
    %1 = vector.load %arg2[%c0_1, %c0_2] : memref<448x128xbf16, #tpu.memory_space<vmem>>, vector<64x128xbf16>
    %cst = arith.constant dense<0.000000e+00> : vector<2x128xf32>
    %2 = tpu.matmul %0, %1, %cst {dimension_numbers = #tpu.dot_dimension_numbers<[1], [0], [0], [1], [0, 0, 1, 1], [], []>} : vector<2x64xbf16>, vector<64x128xbf16>, vector<2x128xf32> -> vector<2x128xf32>
    %c0_3 = arith.constant 0 : index
    %c0_4 = arith.constant 0 : index
    %3 = vector.load %arg3[%c0_3, %c0_4] : memref<4x128xf32, #tpu.memory_space<vmem>>, vector<1x128xf32>
    %4 = vector.broadcast %3 : vector<1x128xf32> to vector<2x128xf32>
    %5 = arith.addf %2, %4 : vector<2x128xf32>
    %cst_5 = arith.constant 0.000000e+00 : f32
    %6 = vector.broadcast %cst_5 : f32 to vector<2x128xf32>
    %7 = arith.cmpf ogt, %5, %6 : vector<2x128xf32>
    %cst_6 = arith.constant 0.000000e+00 : f32
    %8 = vector.broadcast %cst_6 : f32 to vector<2x128xf32>
    %9 = arith.minimumf %5, %8 : vector<2x128xf32>
    %10 = math.exp %9 : vector<2x128xf32>
    %cst_7 = arith.constant 1.000000e+00 : f32
    %11 = vector.broadcast %cst_7 : f32 to vector<2x128xf32>
    %12 = arith.subf %10, %11 : vector<2x128xf32>
    %13 = arith.select %7, %5, %12 : vector<2x128xi1>, vector<2x128xf32>
    %14 = arith.truncf %13 : vector<2x128xf32> to vector<2x128xbf16>
    %c64 = arith.constant 64 : index
    %c0_8 = arith.constant 0 : index
    %15 = vector.load %arg2[%c64, %c0_8] : memref<448x128xbf16, #tpu.memory_space<vmem>>, vector<128x128xbf16>
    %cst_9 = arith.constant dense<0.000000e+00> : vector<2x128xf32>
    %16 = tpu.matmul %14, %15, %cst_9 {dimension_numbers = #tpu.dot_dimension_numbers<[1], [0], [0], [1], [0, 0, 1, 1], [], []>} : vector<2x128xbf16>, vector<128x128xbf16>, vector<2x128xf32> -> vector<2x128xf32>
    %c1 = arith.constant 1 : index
    %c0_10 = arith.constant 0 : index
    %17 = vector.load %arg3[%c1, %c0_10] : memref<4x128xf32, #tpu.memory_space<vmem>>, vector<1x128xf32>
    %18 = vector.broadcast %17 : vector<1x128xf32> to vector<2x128xf32>
    %19 = arith.addf %16, %18 : vector<2x128xf32>
    %cst_11 = arith.constant 0.000000e+00 : f32
    %20 = vector.broadcast %cst_11 : f32 to vector<2x128xf32>
    %21 = arith.cmpf ogt, %19, %20 : vector<2x128xf32>
    %cst_12 = arith.constant 0.000000e+00 : f32
    %22 = vector.broadcast %cst_12 : f32 to vector<2x128xf32>
    %23 = arith.minimumf %19, %22 : vector<2x128xf32>
    %24 = math.exp %23 : vector<2x128xf32>
    %cst_13 = arith.constant 1.000000e+00 : f32
    %25 = vector.broadcast %cst_13 : f32 to vector<2x128xf32>
    %26 = arith.subf %24, %25 : vector<2x128xf32>
    %27 = arith.select %21, %19, %26 : vector<2x128xi1>, vector<2x128xf32>
    %28 = arith.truncf %27 : vector<2x128xf32> to vector<2x128xbf16>
    %c192 = arith.constant 192 : index
    %c0_14 = arith.constant 0 : index
    %29 = vector.load %arg2[%c192, %c0_14] : memref<448x128xbf16, #tpu.memory_space<vmem>>, vector<128x128xbf16>
    %cst_15 = arith.constant dense<0.000000e+00> : vector<2x128xf32>
    %30 = tpu.matmul %28, %29, %cst_15 {dimension_numbers = #tpu.dot_dimension_numbers<[1], [0], [0], [1], [0, 0, 1, 1], [], []>} : vector<2x128xbf16>, vector<128x128xbf16>, vector<2x128xf32> -> vector<2x128xf32>
    %c2 = arith.constant 2 : index
    %c0_16 = arith.constant 0 : index
    %31 = vector.load %arg3[%c2, %c0_16] : memref<4x128xf32, #tpu.memory_space<vmem>>, vector<1x128xf32>
    %32 = vector.broadcast %31 : vector<1x128xf32> to vector<2x128xf32>
    %33 = arith.addf %30, %32 : vector<2x128xf32>
    %cst_17 = arith.constant 0.000000e+00 : f32
    %34 = vector.broadcast %cst_17 : f32 to vector<2x128xf32>
    %35 = arith.cmpf ogt, %33, %34 : vector<2x128xf32>
    %cst_18 = arith.constant 0.000000e+00 : f32
    %36 = vector.broadcast %cst_18 : f32 to vector<2x128xf32>
    %37 = arith.minimumf %33, %36 : vector<2x128xf32>
    %38 = math.exp %37 : vector<2x128xf32>
    %cst_19 = arith.constant 1.000000e+00 : f32
    %39 = vector.broadcast %cst_19 : f32 to vector<2x128xf32>
    %40 = arith.subf %38, %39 : vector<2x128xf32>
    %41 = arith.select %35, %33, %40 : vector<2x128xi1>, vector<2x128xf32>
    %42 = arith.truncf %41 : vector<2x128xf32> to vector<2x128xbf16>
    %c320 = arith.constant 320 : index
    %c0_20 = arith.constant 0 : index
    %43 = vector.load %arg2[%c320, %c0_20] : memref<448x128xbf16, #tpu.memory_space<vmem>>, vector<128x128xbf16>
    %cst_21 = arith.constant dense<0.000000e+00> : vector<2x128xf32>
    %44 = tpu.matmul %42, %43, %cst_21 {dimension_numbers = #tpu.dot_dimension_numbers<[1], [0], [0], [1], [0, 0, 1, 1], [], []>} : vector<2x128xbf16>, vector<128x128xbf16>, vector<2x128xf32> -> vector<2x128xf32>
    %c3 = arith.constant 3 : index
    %c0_22 = arith.constant 0 : index
    %45 = vector.load %arg3[%c3, %c0_22] : memref<4x128xf32, #tpu.memory_space<vmem>>, vector<1x128xf32>
    %46 = vector.broadcast %45 : vector<1x128xf32> to vector<2x128xf32>
    %47 = arith.addf %44, %46 : vector<2x128xf32>
    %cst_23 = arith.constant 0.000000e+00 : f32
    %48 = vector.broadcast %cst_23 : f32 to vector<2x128xf32>
    %49 = arith.cmpf ogt, %47, %48 : vector<2x128xf32>
    %cst_24 = arith.constant 0.000000e+00 : f32
    %50 = vector.broadcast %cst_24 : f32 to vector<2x128xf32>
    %51 = arith.minimumf %47, %50 : vector<2x128xf32>
    %52 = math.exp %51 : vector<2x128xf32>
    %cst_25 = arith.constant 1.000000e+00 : f32
    %53 = vector.broadcast %cst_25 : f32 to vector<2x128xf32>
    %54 = arith.subf %52, %53 : vector<2x128xf32>
    %55 = arith.select %49, %47, %54 : vector<2x128xi1>, vector<2x128xf32>
    %c0_26 = arith.constant 0 : index
    %c0_27 = arith.constant 0 : index
    %56 = vector.load %arg4[%c0_26, %c0_27] : memref<2x128xf32, #tpu.memory_space<vmem>>, vector<2x128xf32>
    tpu.vector_store %arg4[%c0_26, %c0_27], %55 {strides = array<i32>} : memref<2x128xf32, #tpu.memory_space<vmem>>, vector<2x128xf32>,
    return
  }
  func.func @transform_0(%arg0: i32) -> (i32, i32) {
    %c0_i32 = arith.constant 0 : i32
    %c0_i32_0 = arith.constant 0 : i32
    return %arg0, %c0_i32 : i32, i32
  }
  func.func @transform_1(%arg0: i32) -> (i32, i32) {
    %c0_i32 = arith.constant 0 : i32
    %c0_i32_0 = arith.constant 0 : i32
    %c0_i32_1 = arith.constant 0 : i32
    return %c0_i32, %c0_i32_0 : i32, i32
  }
  func.func @transform_2(%arg0: i32) -> (i32, i32) {
    %c0_i32 = arith.constant 0 : i32
    %c0_i32_0 = arith.constant 0 : i32
    %c0_i32_1 = arith.constant 0 : i32
    return %c0_i32, %c0_i32_0 : i32, i32
  }
  func.func @transform_3(%arg0: i32) -> (i32, i32) {
    %c0_i32 = arith.constant 0 : i32
    %c0_i32_0 = arith.constant 0 : i32
    return %arg0, %c0_i32 : i32, i32
  }
}

</mosaic_0001>

<bundles_post_ra>
// kernel: tpu_custom_call.1
= control target key start
LH: loop header
LB: loop body
LE: loop exit
PB: predicated region body
PF: predicated region fallthrough
CT: control target
= control target key end

     0   :  { %8 = vsyncpa [#allocation3], 0  ;;  %s697_s0 = inlined_call_operand.hbm [shape: bf16[2,64], index: 0, kind: input, shape index: {}]   ;;  %s698_s1 = inlined_call_operand.hbm [shape: bf16[448,128], index: 1, kind: input, shape index: {}]   ;;  %s699_s2 = inlined_call_operand.hbm [shape: f32[4,128], index: 2, kind: input, shape index: {}]   ;;  %s700_s3 = inlined_call_operand.hbm [shape: f32[2,128], index: 3, kind: output, shape index: {}]  }
   0x1   :  { %9 = vsyncpa [#allocation6], 0  ;;  %s26_s14 = sshll.u32 %s698_s1, 4  ;;  %s27_s14 = int_to_ptr.hbm [resolvable:$true] %s26_s14 }
   0x2   :  { %10 = vsyncpa [#allocation4], 0  ;;  %s659_s15 = smov [#allocation5]   ;;  %s16_s19 = sshll.u32 %s697_s0, 4  ;;  %s17_s19 = int_to_ptr.hbm [resolvable:$true] %s16_s19 }
   0x3   :  { %s28_s16 = sshll.u32 %s659_s15, 4  ;;  %s660_s20 = smov 64   ;;  %s29_s16 = int_to_ptr.vmem [resolvable:$true] %s28_s16 }
   0x4   :  { %s661_s21 = smov 4   ;;  %s662_s22 = smov [#allocation2]  }
   0x5   :  { %34 = dma.hbm_to_vmem [thread:$0]  %s27_s14, 3584, %s29_s16, [#allocation6], %s660_s20, %s660_s20, %s661_s21  }
   0x6   :  { %s18_s23 = sshll.u32 %s662_s22, 4  ;;  %s40_s26 = sshll.u32 %s699_s2, 4  ;;  %s19_s23 = int_to_ptr.vmem [resolvable:$true] %s18_s23  ;;  %s41_s26 = int_to_ptr.hbm [resolvable:$true] %s40_s26 }
   0x7   :  { %21 = dma.hbm_to_vmem [thread:$0]  %s17_s19, 16, %s19_s23, [#allocation3]  }
   0x8   :  { %s663_s1 = smov [#allocation7]  }
   0x9   :  { %s42_s27 = sshll.u32 %s663_s1, 4  ;;  %s43_s27 = int_to_ptr.vmem [resolvable:$true] %s42_s27 }
   0xa   :  { %45 = dma.hbm_to_vmem [thread:$0]  %s41_s26, 64, %s43_s27, [#allocation6]  }
   0xb   :  { %653 = dma.done.wait [#allocation3], 16  }
   0xc   :  { %654 = vsyncadd [#allocation3], 4294967280 }
   0xd   :  { %655 = dma.done.wait [#allocation6], 3648  }
   0xe   :  { %656 = vsyncadd [#allocation6], 4294963648  ;;  %v514_v0 = vld [vmem:[#allocation5 + $0x18] sm:$0xff]  ;;  %v513_v2 = vld [vmem:[#allocation5 + $0x10] sm:$0xff]  ;;  %vm94_vm0 = vcmask 523264   ;;  %s664_s0 = smov [#allocation8]  }
   0xf   :  { %v522_v1 = vld [vmem:[#allocation5 + $0x58] sm:$0xff]  ;;  %102 = vmatpush.bf16.msra.mxu0 %v514_v0  ;;  %v521_v3 = vld [vmem:[#allocation5 + $0x50] sm:$0xff]  ;;  %v512_v4 = vld [vmem:[#allocation5 + $0x8] sm:$0xff]  ;;  %s381_s2 = sshll.u32 %s664_s0, 4  ;;  %s383_s30 = sshll.u32 %s700_s3, 4  ;;  %s382_s2 = int_to_ptr.vmem [resolvable:$true] %s381_s2  ;;  %s384_s30 = int_to_ptr.hbm [resolvable:$true] %s383_s30 }
  0x10   :  { %184 = vmatpush.bf16.msra.mxu1 %v522_v1  ;;  %v520_v5 = vld [vmem:[#allocation5 + $0x48] sm:$0xff]  ;;  %v511_v6 = vld [vmem:[#allocation5] sm:$0xff]  ;;  %v59_v7 = vld [vmem:[#allocation2] sm:$0x1] }
  0x11   :  { %v519_v8 = vld [vmem:[#allocation5 + $0x40] sm:$0xff]  ;;  %v518_v9 = vld [vmem:[#allocation5 + $0x38] sm:$0xff]  ;;  %v517_v10 = vld [vmem:[#allocation5 + $0x30] sm:$0xff] }
  0x12   :  { %v516_v11 = vld [vmem:[#allocation5 + $0x28] sm:$0xff]  ;;  %v515_v12 = vld [vmem:[#allocation5 + $0x20] sm:$0xff]  ;;  %v530_v13 = vld [vmem:[#allocation5 + $0x98] sm:$0xff] }
  0x13   :  { %103 = vmatpush.bf16.msra.mxu0 %v513_v2  ;;  %270 = vmatpush.bf16.msra.mxu2 %v530_v13  ;;  %v529_v14 = vld [vmem:[#allocation5 + $0x90] sm:$0xff]  ;;  %v528_v15 = vld [vmem:[#allocation5 + $0x88] sm:$0xff]  ;;  %v545_v16 = vld [vmem:[#allocation7] ss:$0 sm:$0xff] }
  0x14   :  { %185 = vmatpush.bf16.msra.mxu1 %v521_v3  ;;  %v527_v26 = vld [vmem:[#allocation5 + $0x80] sm:$0xff]  ;;  %v526_v27 = vld [vmem:[#allocation5 + $0x78] sm:$0xff]  ;;  %v525_v28 = vld [vmem:[#allocation5 + $0x70] sm:$0xff] }
  0x15   :  { %v524_v29 = vld [vmem:[#allocation5 + $0x68] sm:$0xff]  ;;  %v523_v30 = vld [vmem:[#allocation5 + $0x60] sm:$0xff]  ;;  %v538_v31 = vld [vmem:[#allocation5 + $0xd8] sm:$0xff] }
  0x16   :  { %356 = vmatpush.bf16.msra.mxu3 %v538_v31  ;;  %v537_v32 = vld [vmem:[#allocation5 + $0xd0] sm:$0xff]  ;;  %v536_v33 = vld [vmem:[#allocation5 + $0xc8] sm:$0xff]  ;;  %v546_v34 = vld [vmem:[#allocation7 + $0x1] ss:$0 sm:$0xff] }
  0x17   :  { %104 = vmatpush.bf16.msra.mxu0 %v512_v4  ;;  %271 = vmatpush.bf16.msra.mxu2 %v529_v14  ;;  %v535_v44 = vld [vmem:[#allocation5 + $0xc0] sm:$0xff]  ;;  %v534_v45 = vld [vmem:[#allocation5 + $0xb8] sm:$0xff]  ;;  %v533_v46 = vld [vmem:[#allocation5 + $0xb0] sm:$0xff] }
  0x18   :  { %186 = vmatpush.bf16.msra.mxu1 %v520_v5  ;;  %v532_v47 = vld [vmem:[#allocation5 + $0xa8] sm:$0xff]  ;;  %v531_v48 = vld [vmem:[#allocation5 + $0xa0] sm:$0xff] }
  0x19   :  { %v547_v49 = vld [vmem:[#allocation7 + $0x2] ss:$0 sm:$0xff]  ;;  %v548_v59 = vld [vmem:[#allocation7 + $0x3] ss:$0 sm:$0xff] }
  0x1a   :  { %357 = vmatpush.bf16.msra.mxu3 %v537_v32 }
  0x1b   :  { %105 = vmatpush.bf16.msra.mxu0 %v511_v6  ;;  %272 = vmatpush.bf16.msra.mxu2 %v528_v15 }
  0x1c   :  { %187 = vmatpush.bf16.msra.mxu1 %v519_v8 }
  0x1e   :  { %410 = vmatmul.msk.bf16.vlgmr.msra.gmra.mxu0 %vm94_vm0, %v59_v7  ;;  %358 = vmatpush.bf16.msra.mxu3 %v536_v33 }
  0x1f   :  { %273 = vmatpush.bf16.msra.mxu2 %v527_v26 }
  0x20   :  { %188 = vmatpush.bf16.msra.mxu1 %v518_v9 }
  0x22   :  { %359 = vmatpush.bf16.msra.mxu3 %v535_v44 }
  0x23   :  { %274 = vmatpush.bf16.msra.mxu2 %v526_v27 }
  0x24   :  { %189 = vmatpush.bf16.msra.mxu1 %v517_v10 }
  0x26   :  { %360 = vmatpush.bf16.msra.mxu3 %v534_v45 }
  0x27   :  { %275 = vmatpush.bf16.msra.mxu2 %v525_v28 }
  0x28   :  { %190 = vmatpush.bf16.msra.mxu1 %v516_v11 }
  0x2a   :  { %361 = vmatpush.bf16.msra.mxu3 %v533_v46 }
  0x2b   :  { %276 = vmatpush.bf16.msra.mxu2 %v524_v29 }
  0x2c   :  { %191 = vmatpush.bf16.msra.mxu1 %v515_v12 }
  0x2e   :  { %362 = vmatpush.bf16.msra.mxu3 %v532_v47 }
  0x2f   :  { %277 = vmatpush.bf16.msra.mxu2 %v523_v30 }
  0x32   :  { %363 = vmatpush.bf16.msra.mxu3 %v531_v48 }
  0x9b   :  { %v107_v17 = vpop.f32.mrf.mxu0 }
  0x9c   :  { %v108_v18 = vadd.f32 %v545_v16, %v107_v17 }
  0x9e   :  { %v112_v19 = vmin.f32 %v108_v18, 0.0  ;;  %vm111_vm1 = vcmp.gt.f32.partialorder %v108_v18, 0.0 }
  0xa0   :  { %v113_v20 = vmul.f32 1.442695, %v112_v19 }
  0xa2   :  { %549 = vpow2.f32 %v113_v20 }
  0xa3   :  { %v109_v21 = vpop.f32.mrf.mxu0 }
  0xa8   :  { %v550_v22 = vpop.eup %549 }
  0xa9   :  { %v411_v23 = vadd.f32 -1.0, %v550_v22 }
  0xab   :  { %v116_v24 = vsel %vm111_vm1, %v108_v18, %v411_v23 }
  0xac   :  { %v117_v25 = vpack.c.bf16 %v116_v24, %v116_v24 }
  0xae   :  { %192 = vmatmul.bf16.vlgmr.msra.gmra.mxu1 %v117_v25 }
 0x12b   :  { %v193_v35 = vpop.f32.mrf.mxu1 }
 0x12c   :  { %v194_v36 = vadd.f32 %v546_v34, %v193_v35 }
 0x12e   :  { %v198_v37 = vmin.f32 %v194_v36, 0.0  ;;  %vm197_vm2 = vcmp.gt.f32.partialorder %v194_v36, 0.0 }
 0x130   :  { %v199_v38 = vmul.f32 1.442695, %v198_v37 }
 0x132   :  { %551 = vpow2.f32 %v199_v38 }
 0x133   :  { %v195_v39 = vpop.f32.mrf.mxu1 }
 0x138   :  { %v552_v40 = vpop.eup %551 }
 0x139   :  { %v444_v41 = vadd.f32 -1.0, %v552_v40 }
 0x13b   :  { %v202_v42 = vsel %vm197_vm2, %v194_v36, %v444_v41 }
 0x13c   :  { %v203_v43 = vpack.c.bf16 %v202_v42, %v202_v42 }
 0x13e   :  { %278 = vmatmul.bf16.vlgmr.msra.gmra.mxu2 %v203_v43 }
 0x1c1   :  { %v279_v50 = vpop.f32.mrf.mxu2 }
 0x1c2   :  { %v280_v51 = vadd.f32 %v547_v49, %v279_v50 }
 0x1c4   :  { %v284_v52 = vmin.f32 %v280_v51, 0.0  ;;  %vm283_vm3 = vcmp.gt.f32.partialorder %v280_v51, 0.0 }
 0x1c6   :  { %v285_v53 = vmul.f32 1.442695, %v284_v52 }
 0x1c8   :  { %553 = vpow2.f32 %v285_v53 }
 0x1c9   :  { %v281_v54 = vpop.f32.mrf.mxu2 }
 0x1ce   :  { %v554_v55 = vpop.eup %553 }
 0x1cf   :  { %v477_v56 = vadd.f32 -1.0, %v554_v55 }
 0x1d1   :  { %v288_v57 = vsel %vm283_vm3, %v280_v51, %v477_v56 }
 0x1d2   :  { %v289_v58 = vpack.c.bf16 %v288_v57, %v288_v57 }
 0x1d4   :  { %364 = vmatmul.bf16.vlgmr.msra.gmra.mxu3 %v289_v58 }
 0x257   :  { %v365_v60 = vpop.f32.mrf.mxu3 }
 0x258   :  { %v366_v61 = vadd.f32 %v548_v59, %v365_v60 }
 0x25a   :  { %v370_v62 = vmin.f32 %v366_v61, 0.0  ;;  %vm369_vm4 = vcmp.gt.f32.partialorder %v366_v61, 0.0 }
 0x25c   :  { %v371_v63 = vmul.f32 1.442695, %v370_v62 }
 0x25e   :  { %555 = vpow2.f32 %v371_v63 }
 0x25f   :  { %v367_v0 = vpop.f32.mrf.mxu3 }
 0x264   :  { %v556_v1 = vpop.eup %555 }
 0x265   :  { %v510_v2 = vadd.f32 -1.0, %v556_v1 }
 0x267   :  { %v374_v3 = vsel %vm369_vm4, %v366_v61, %v510_v2 }
 0x268   :  { %375 = vst [vmem:[#allocation8] sm:$0x3] %v374_v3 }
 0x269   :  { %386 = dma.vmem_to_hbm [thread:$0]  %s382_s2, 32, %s384_s30, [#allocation4]  }
 0x26a   :  { %657 = dma.done.wait [#allocation4], 32  }
 0x26b   :  { %658 = vsyncadd [#allocation4], 4294967264 }
 0x26c   :  { %391 = vsyncpa [#allocation3], 1 }
 0x26d   :  { %392 = vsyncpa [#allocation6], 1 }
 0x26e   :  { %393 = vsyncpa [#allocation4], 1 }

</bundles_post_ra>
